<compile_context>
chip_gen: v7x
topology: tpu7x:2x2x1
jax: 0.10.0
libtpu: 0.0.40
codegen_flags: <defaults>
</compile_context>

<pallas_src>
import functools

import jax
import jax.numpy as jnp
from jax.experimental import pallas as pl
from jax.experimental.pallas import tpu as pltpu


_EPS_SQ = 1e-24                 # (torch normalize eps 1e-12) ** 2
_SMALL_BATCH = 1024             # single untransposed block below this
_MAX_TILE_LANES = 192 * 1024    # batch-tile cap (lane axis), multiple of 128
_VMEM_LIMIT_BYTES = 32 * 1024 * 1024


def _round_up(x, m):
    return ((x + m - 1) // m) * m


# ---------------------------------------------------------------------------
# Tiled kernel (large B): batch on the lane axis (lane-dense loads/stores),
# features on sublanes.
#   xt_ref: (4, TM) f32 VMEM   w_ref: (4, 1) f32 VMEM
#   b_ref : (1,)    f32 SMEM   o_ref: (1, TM) f32 VMEM
# ---------------------------------------------------------------------------
def _normalize_linear_tiled_kernel(xt_ref, w_ref, b_ref, o_ref):
    x = xt_ref[...]                                        # whole-tile load
    w = w_ref[...]                                         # (4,1) lane-broadcast
    xx = jnp.sum(x * x, axis=0, keepdims=True)             # (1,TM) XLU sublane reduce
    xw = jnp.sum(x * w, axis=0, keepdims=True)             # (1,TM)
    inv_norm = jax.lax.rsqrt(jnp.maximum(xx, jnp.float32(_EPS_SQ)))   # EUP
    o_ref[...] = (xw * inv_norm + b_ref[0]).astype(o_ref.dtype)


# ---------------------------------------------------------------------------
# Small-batch kernel: single full-extent (B, 4) block, untransposed input,
# (B, 1) output written directly.
# ---------------------------------------------------------------------------
def _normalize_linear_small_kernel(x_ref, w_ref, b_ref, o_ref):
    x = x_ref[...]                                         # (B, F)
    w = w_ref[...]                                         # (1, F)
    xx = jnp.sum(x * x, axis=1, keepdims=True)             # (B, 1)
    xw = jnp.sum(x * w, axis=1, keepdims=True)             # (B, 1)
    inv_norm = jax.lax.rsqrt(jnp.maximum(xx, jnp.float32(_EPS_SQ)))
    o_ref[...] = (xw * inv_norm + b_ref[0]).astype(o_ref.dtype)


def _forward_small(x, w_row, b):
    B, F = x.shape
    cost = pl.CostEstimate(flops=B * (4 * F + 3), transcendentals=B,
                           bytes_accessed=(B * F + B + F + 1) * 4)
    return pl.pallas_call(
        _normalize_linear_small_kernel,
        out_shape=jax.ShapeDtypeStruct((B, 1), jnp.float32),
        grid_spec=pltpu.PrefetchScalarGridSpec(
            num_scalar_prefetch=0,
            grid=(1,),
            in_specs=[
                pl.BlockSpec((B, F), lambda i: (0, 0)),
                pl.BlockSpec((1, F), lambda i: (0, 0)),
                pl.BlockSpec(memory_space=pltpu.MemorySpace.SMEM),
            ],
            out_specs=pl.BlockSpec((B, 1), lambda i: (0, 0)),
        ),
        compiler_params=pltpu.CompilerParams(dimension_semantics=("arbitrary",)),
        cost_estimate=cost,
    )(x, w_row, b)


def _forward_tiled(x, w_row, b):
    B, F = x.shape
    # Layout plumbing only (one XLA copy): batch -> lanes, features -> sublanes.
    # TODO(synk): eliminate this transpose pass for very large B (keep the activation
    # pre-transposed upstream, or de-interleave the natural (B,4) layout in-kernel
    # from the free (B,4)->(B//32,128) reshape); kept as-is for portable lowering.
    xt = x.T                                               # (F, B)
    w_col = w_row.reshape(F, 1)

    # >= 2 grid steps (v7x 2-TC sharding) and a per-generation-safe VMEM budget.
    tm = min(_MAX_TILE_LANES, _round_up(pl.cdiv(B, 2), 128))
    grid = pl.cdiv(B, tm)

    cost = pl.CostEstimate(flops=B * (4 * F + 4), transcendentals=B,
                           bytes_accessed=(B * F + B + F + 1) * 4)
    out = pl.pallas_call(
        _normalize_linear_tiled_kernel,
        out_shape=jax.ShapeDtypeStruct((1, B), jnp.float32),
        grid_spec=pltpu.PrefetchScalarGridSpec(
            num_scalar_prefetch=0,
            grid=(grid,),
            in_specs=[
                pl.BlockSpec((F, tm), lambda i: (0, i)),
                pl.BlockSpec((F, 1), lambda i: (0, 0)),
                pl.BlockSpec(memory_space=pltpu.MemorySpace.SMEM),
            ],
            out_specs=pl.BlockSpec((1, tm), lambda i: (0, i)),
        ),
        compiler_params=pltpu.CompilerParams(
            dimension_semantics=("parallel",),
            vmem_limit_bytes=_VMEM_LIMIT_BYTES,
        ),
        cost_estimate=cost,
    )(xt, w_col, b)
    return out.reshape(B, 1)        # (1,B) -> (B,1): free contiguous reshape


@jax.jit
def simple_model_forward(x, weight, bias):
    """x: (B, 4) f32; weight: (1, 4) f32; bias: (1,) f32 -> (B, 1) f32."""
    B, F = x.shape
    x = x.astype(jnp.float32)
    w_row = weight.reshape(1, F).astype(jnp.float32)
    b = bias.reshape(-1).astype(jnp.float32)
    if B <= _SMALL_BATCH:
        return _forward_small(x, w_row, b)
    return _forward_tiled(x, w_row, b)


if __name__ == "__main__":
    key = jax.random.PRNGKey(0)
    kx, kw, kb, kx2 = jax.random.split(key, 4)

    B, F = 8, 4                      # small shape consistent with the module
    x = jax.random.normal(kx, (B, F), dtype=jnp.float32)
    # Deterministic init matching torch: uniform_(-0.1, 0.1) on weight and bias.
    weight = jax.random.uniform(kw, (1, F), minval=-0.1, maxval=0.1, dtype=jnp.float32)
    bias = jax.random.uniform(kb, (1,), minval=-0.1, maxval=0.1, dtype=jnp.float32)

    def reference(xv):
        norm = jnp.sqrt(jnp.sum(xv * xv, axis=1, keepdims=True))
        xn = xv / jnp.maximum(norm, 1e-12)
        return xn @ weight.T + bias

    out = simple_model_forward(x, weight, bias)
    jax.block_until_ready(out)
    assert out.shape == (B, 1)
    # Mirrors the module's `assert torch.isnan(x).sum() == 0` host-side: any NaN in x
    # propagates through x*x / x.w into y, so checking the output catches it.
    assert not bool(jnp.isnan(out).any())
    assert jnp.allclose(out, reference(x), atol=1e-4, rtol=1e-4)

    # Also exercise the tiled path: 2 "parallel" grid steps plus a ragged last block.
    B2 = 6200
    x2 = jax.random.normal(kx2, (B2, F), dtype=jnp.float32)
    out2 = simple_model_forward(x2, weight, bias)
    jax.block_until_ready(out2)
    assert out2.shape == (B2, 1)
    assert not bool(jnp.isnan(out2).any())
    assert jnp.allclose(out2, reference(x2), atol=1e-4, rtol=1e-4)

    print("KERNEL_OK")
</pallas_src>

<mosaic_0001>
module attributes {stable_mosaic.version = 11 : i64} {
  func.func @_normalize_linear_small_kernel(%arg0: i32, %arg1: memref<8x4xf32, #tpu.memory_space<vmem>>, %arg2: memref<1x4xf32, #tpu.memory_space<vmem>>, %arg3: memref<1xf32, #tpu.memory_space<smem>>, %arg4: memref<8x1xf32, #tpu.memory_space<vmem>>) attributes {dimension_semantics = [#tpu.dimension_semantics<arbitrary>], iteration_bounds = array<i64: 1>, scalar_prefetch = 0 : i64, scratch_operands = 0 : i64, tpu.core_type = #tpu.core_type<tc>, window_params = [{pipeline_mode = #tpu.pipeline_mode<synchronous>, transform_indices = @transform_0, window_bounds = array<i64: 8, 4>}, {pipeline_mode = #tpu.pipeline_mode<synchronous>, transform_indices = @transform_1, window_bounds = array<i64: 1, 4>}, {transform_indices = @transform_2, window_bounds = array<i64: 1>}, {pipeline_mode = #tpu.pipeline_mode<synchronous>, transform_indices = @transform_3, window_bounds = array<i64: 8, 1>}]} {
    %c0 = arith.constant 0 : index
    %c0_0 = arith.constant 0 : index
    %0 = vector.load %arg1[%c0, %c0_0] : memref<8x4xf32, #tpu.memory_space<vmem>>, vector<8x4xf32>
    %c0_1 = arith.constant 0 : index
    %c0_2 = arith.constant 0 : index
    %1 = vector.load %arg2[%c0_1, %c0_2] : memref<1x4xf32, #tpu.memory_space<vmem>>, vector<1x4xf32>
    %2 = arith.mulf %0, %0 : vector<8x4xf32>
    %cst = arith.constant dense<0.000000e+00> : vector<8xf32>
    %3 = vector.multi_reduction <add>, %2, %cst [1] : vector<8x4xf32> to vector<8xf32>
    %4 = vector.shape_cast %3 : vector<8xf32> to vector<8x1xf32>
    %5 = vector.broadcast %1 : vector<1x4xf32> to vector<8x4xf32>
    %6 = arith.mulf %0, %5 : vector<8x4xf32>
    %cst_3 = arith.constant dense<0.000000e+00> : vector<8xf32>
    %7 = vector.multi_reduction <add>, %6, %cst_3 [1] : vector<8x4xf32> to vector<8xf32>
    %8 = vector.shape_cast %7 : vector<8xf32> to vector<8x1xf32>
    %cst_4 = arith.constant 1.000000e-24 : f32
    %9 = vector.broadcast %cst_4 : f32 to vector<8x1xf32>
    %10 = arith.maximumf %4, %9 : vector<8x1xf32>
    %11 = math.rsqrt %10 : vector<8x1xf32>
    %12 = arith.mulf %8, %11 : vector<8x1xf32>
    %c0_5 = arith.constant 0 : index
    %13 = memref.load %arg3[%c0_5] : memref<1xf32, #tpu.memory_space<smem>>
    %14 = vector.broadcast %13 : f32 to vector<8x1xf32>
    %15 = arith.addf %12, %14 : vector<8x1xf32>
    %c0_6 = arith.constant 0 : index
    %c0_7 = arith.constant 0 : index
    %16 = vector.load %arg4[%c0_6, %c0_7] : memref<8x1xf32, #tpu.memory_space<vmem>>, vector<8x1xf32>
    tpu.vector_store %arg4[%c0_6, %c0_7], %15 {strides = array<i32>} : memref<8x1xf32, #tpu.memory_space<vmem>>, vector<8x1xf32>,
    return
  }
  func.func @transform_0(%arg0: i32) -> (i32, i32) {
    %c0_i32 = arith.constant 0 : i32
    %c0_i32_0 = arith.constant 0 : i32
    %c0_i32_1 = arith.constant 0 : i32
    return %c0_i32, %c0_i32_0 : i32, i32
  }
  func.func @transform_1(%arg0: i32) -> (i32, i32) {
    %c0_i32 = arith.constant 0 : i32
    %c0_i32_0 = arith.constant 0 : i32
    %c0_i32_1 = arith.constant 0 : i32
    return %c0_i32, %c0_i32_0 : i32, i32
  }
  func.func @transform_2(%arg0: i32) -> i32 {
    %c0_i32 = arith.constant 0 : i32
    %c0_i32_0 = arith.constant 0 : i32
    return %c0_i32 : i32
  }
  func.func @transform_3(%arg0: i32) -> (i32, i32) {
    %c0_i32 = arith.constant 0 : i32
    %c0_i32_0 = arith.constant 0 : i32
    %c0_i32_1 = arith.constant 0 : i32
    return %c0_i32, %c0_i32_0 : i32, i32
  }
}

</mosaic_0001>

<bundles_post_ra>
// kernel: simple_model_forward.1
= control target key start
LH: loop header
LB: loop body
LE: loop exit
PB: predicated region body
PF: predicated region fallthrough
CT: control target
= control target key end

     0   :  { %vm18_vm0 = vcmask 31744   ;;  %vm38_vm1 = vcmask 7168   ;;  %s79_s0 = inlined_call_operand.vmem [shape: f32[8,4], index: 0, kind: input, shape index: {}]   ;;  %s80_s1 = inlined_call_operand.vmem [shape: f32[1,4], index: 1, kind: input, shape index: {}]   ;;  %s81_s2 = inlined_call_operand.<no memory space> [shape: f32[1], index: 2, kind: input, shape index: {}]   ;;  %s82_s3 = inlined_call_operand.vmem [shape: f32[8,1], index: 3, kind: output, shape index: {}]  }
   0x1   :  { %v15_v0 = vld [vmem:[%s79_s0] sm:$0xff]  ;;  %v36_v10 = vstv %s81_s2 }
   0x2   :  { %v44_v1 = vld [vmem:[%s80_s1] ss:$0 sm:$0xff]  ;;  %v17_v2 = vmul.f32 %v15_v0, %v15_v0 }
   0x3   :  { %v28_v3 = vmul.f32 %v44_v1, %v15_v0 }
   0x4   :  { %v19_v4 = vsel %vm18_vm0, %v17_v2, 0.0 }
   0x5   :  { %20 = vadd.xlane.f32.xlu0 %v19_v4  ;;  %v29_v5 = vsel %vm18_vm0, %v28_v3, 0.0 }
   0x9   :  { %30 = vadd.xlane.f32.xlu0 %v29_v5 }
  0x92   :  { %v21_v6 = vpop.xlane.xlu0 %20 }
  0x93   :  { %v32_v7 = vmax.f32 %v21_v6, 1e-24 }
  0x95   :  { %45 = vrsqrt.f32 %v32_v7 }
  0x96   :  { %v31_v8 = vpop.xlane.xlu0 %30 }
  0x9f   :  { %v46_v9 = vpop.eup %45 }
  0xa0   :  { %v34_v11 = vmul.f32 %v46_v9, %v31_v8 }
  0xa2   :  { %v37_v12 = vadd.f32 %v36_v10, %v34_v11 }
  0xa4   :  { %39 = vst.msk [vmem:[%s82_s3] sm:$0xff] %vm38_vm1, %v37_v12 }

</bundles_post_ra>
